<compile_context>
chip_gen: v7x
topology: tpu7x:2x2x1
jax: 0.10.0
libtpu: 0.0.40
codegen_flags: <defaults>
</compile_context>

<pallas_src>
import numpy as np
import jax
import jax.numpy as jnp
from jax.experimental import pallas as pl
from jax.experimental.pallas import tpu as pltpu

K_NEIGHBORS = 3
TN_TARGET = 4096      # lane-dense output tile target (multiple of 128)


def _round_up(x, m):
    return ((x + m - 1) // m) * m


def _pick_tile(dim, target):
    """Largest 128-multiple divisor of `dim` that is <= max(target, 128).
    `dim` must itself be a multiple of 128 (guaranteed by padding), so 128
    always divides and the loop terminates -- no full-dim fallback."""
    assert dim % 128 == 0, dim
    t = min(dim, max(128, (target // 128) * 128))
    while dim % t:
        t -= 128
    return t


def _vmem_capacity_bytes():
    try:
        return int(pltpu.get_tpu_info().vmem_capacity_bytes)
    except Exception:
        return 64 * 1024 * 1024   # conservative (v7x-sized) fallback


def build_channel_weights(lookup, num_channels, k=K_NEIGHBORS, eps=1e-8):
    """KDTree-query equivalent, restructured per channel.

    Returns:
      weights: (C, Nc_pad, P_pad) float32.  weights[c, j, p] = inverse-distance
               weight of the j-th coded pixel of channel c contributing to
               output pixel p of channel c (zero rows/cols are padding).
      src_idx: (C, Nc_pad) int32 flat pixel indices of each channel's coded
               pixels (0 for padding entries; their weight rows are all zero).
    """
    H, W = lookup.shape
    P = H * W
    P_pad = _round_up(P, 128)
    flat = np.asarray(lookup).ravel()
    yy, xx = np.meshgrid(np.arange(H), np.arange(W), indexing="ij")
    coords = np.stack([yy.ravel(), xx.ravel()], axis=1).astype(np.float64)

    src_lists = [np.nonzero(flat == c)[0] for c in range(num_channels)]
    nc_max = max((len(s) for s in src_lists), default=1)
    nc_pad = _round_up(max(nc_max, 1), 128)

    weights = np.zeros((num_channels, nc_pad, P_pad), dtype=np.float32)
    src_idx = np.zeros((num_channels, nc_pad), dtype=np.int32)
    for c, src in enumerate(src_lists):
        nc = src.shape[0]
        if nc == 0:
            continue   # channel never coded -> all-zero output channel
        src_idx[c, :nc] = src
        kc = min(k, nc)
        # TODO(synk): all-pairs distances are O(P*Nc) host memory; chunk the
        # output-pixel axis (or use a real KDTree) for large images.
        d = np.linalg.norm(coords[:, None, :] - coords[None, src, :], axis=-1)
        nn = np.argsort(d, axis=1)[:, :kc]                  # (P, kc) local src idx
        nd = np.take_along_axis(d, nn, axis=1)
        w = 1.0 / (nd + eps)
        w = w / w.sum(axis=1, keepdims=True)                # normalize to sum 1
        rows = nn.ravel()
        cols = np.repeat(np.arange(P), kc)
        weights[c, rows, cols] = w.ravel()
    return weights, src_idx


def tree_model_forward(coded, weights_bf16, src_idx, out_hw):
    """coded: (B,1,H,W) f32; weights_bf16: (C,Nc_pad,P_pad) bf16;
    src_idx: (C,Nc_pad) int32  ->  (B,C,H,W) f32."""
    H, W = out_hw
    B = coded.shape[0]
    C, nc_pad, P_pad = weights_bf16.shape
    P = H * W

    # Gather each channel's coded source pixels (tiny: C*B*Nc_pad) and pre-cast
    # to bf16 once, so the kernel never re-DMAs or re-casts coded per grid step.
    coded_flat = coded.reshape(B, P)
    gathered = jnp.take(coded_flat, src_idx.reshape(-1), axis=1)
    gathered = gathered.reshape(B, C, nc_pad).transpose(1, 0, 2)
    gathered = gathered.astype(jnp.bfloat16)                 # (C, B, Nc_pad)

    # Per-generation tiling: use ~3/4 of this chip's VMEM; deeper buffering of
    # smaller W tiles on 64-MiB chips (v7x), bigger tiles on 128-MiB v5e/v6e.
    vmem_cap = _vmem_capacity_bytes()
    vmem_budget = max(32 << 20, min((vmem_cap * 3) // 4, vmem_cap - (8 << 20)))
    small_vmem = vmem_cap <= (64 << 20)
    n_bufs = 3 if small_vmem else 2
    tn = _pick_tile(P_pad, TN_TARGET)
    blk_budget = vmem_budget // (2 * n_bufs)                  # bytes per W tile
    tk = _pick_tile(nc_pad, max(128, blk_budget // (2 * tn)))
    n_blocks = P_pad // tn
    k_blocks = nc_pad // tk
    grid = (C, n_blocks, k_blocks)     # reduction (K) axis innermost

    def interp_kernel(g_ref, w_ref, out_ref):
        # g_ref:  (B, Nc_pad) bf16  -- whole channel, VMEM-resident
        # w_ref:  (tk, tn)    bf16  -- streamed weight tile
        # out_ref:(B, tn)     f32   -- resident across the K axis
        k = pl.program_id(2)
        start = pl.multiple_of(k * tk, 128)
        part = jnp.dot(g_ref[:, pl.ds(start, tk)], w_ref[...],
                       preferred_element_type=jnp.float32)

        @pl.when(k == 0)
        def _():
            out_ref[...] = part          # first K step: direct write, no zero-fill

        @pl.when(k > 0)
        def _():
            out_ref[...] += part

    w_spec_kwargs = {}
    if small_vmem and k_blocks >= 3:
        # v7x: 3-deep buffering of the (smaller) weight tiles hides the larger
        # BW x latency product of its HBM.
        w_spec_kwargs["pipeline_mode"] = pl.Buffered(3)
    w_spec = pl.BlockSpec((None, tk, tn), lambda c, n, k: (c, k, n),
                          **w_spec_kwargs)

    out_bn = pl.pallas_call(
        interp_kernel,
        out_shape=jax.ShapeDtypeStruct((B, C * P_pad), jnp.float32),
        grid_spec=pltpu.PrefetchScalarGridSpec(
            num_scalar_prefetch=0,
            grid=grid,
            in_specs=[
                # whole per-channel coded slice; re-DMA only when c changes.
                pl.BlockSpec((None, B, nc_pad), lambda c, n, k: (c, 0, 0)),
                w_spec,
            ],
            # output written directly in (B, C, P_pad) memory order.
            out_specs=pl.BlockSpec((B, tn), lambda c, n, k: (0, c * n_blocks + n)),
        ),
        compiler_params=pltpu.CompilerParams(
            dimension_semantics=("parallel", "parallel", "arbitrary"),
            vmem_limit_bytes=int(vmem_budget)),
        cost_estimate=pl.CostEstimate(
            flops=2 * B * C * nc_pad * P_pad,
            transcendentals=0,
            bytes_accessed=(C * nc_pad * P_pad * 2 + C * B * nc_pad * 2
                            + B * C * P_pad * 4)),
    )(gathered, weights_bf16)

    # (B, C*P_pad) is already (B, C, P_pad) in memory order -> free reshape;
    # slice off the lane padding (no-op when P == P_pad).
    out = out_bn.reshape(B, C, P_pad)[:, :, :P]
    return out.reshape(B, C, H, W)


if __name__ == "__main__":
    B, SZ, C = 2, 16, 6  # small shapes: batch=2, H=W=16, num_channels=6

    key = jax.random.PRNGKey(0)
    k_in, k_lut = jax.random.split(key)

    # Coded single-channel image (NCHW) and a deterministic lookup table that
    # assigns every pixel to one of the C channels (every channel covered).
    coded = jax.random.normal(k_in, (B, 1, SZ, SZ), dtype=jnp.float32)
    perm = jax.random.permutation(k_lut, SZ * SZ)
    lookup_channels = np.asarray(perm % C).reshape(SZ, SZ)

    # Static KDTree-query equivalent -> per-channel bf16 weight matrices.
    weights_f32, src_idx_np = build_channel_weights(lookup_channels, C)
    weights = jnp.asarray(weights_f32).astype(jnp.bfloat16)
    src_idx = jnp.asarray(src_idx_np)

    out = tree_model_forward(coded, weights, src_idx, (SZ, SZ))
    out = jax.block_until_ready(out)
    assert out.shape == (B, C, SZ, SZ), out.shape

    # Exact check of the kernel hot path (same bf16-rounded operands, f32 acc).
    P = SZ * SZ
    g = jnp.take(coded.reshape(B, P), src_idx.reshape(-1), axis=1)
    g = g.reshape(B, C, -1).transpose(1, 0, 2)
    g_bf = g.astype(jnp.bfloat16).astype(jnp.float32)
    ref = jnp.einsum("cbn,cnp->bcp", g_bf, weights.astype(jnp.float32),
                     precision=jax.lax.Precision.HIGHEST)[:, :, :P]
    ref = ref.reshape(B, C, SZ, SZ)
    assert jnp.allclose(out, ref, atol=1e-4), "kernel mismatch vs bf16 reference"

    # Looser check against the full-f32 module semantics (bf16 weight storage
    # introduces <~1% relative error; weights sum to 1 per output pixel).
    ref_f32 = jnp.einsum("cbn,cnp->bcp", g, jnp.asarray(weights_f32),
                         precision=jax.lax.Precision.HIGHEST)[:, :, :P]
    ref_f32 = ref_f32.reshape(B, C, SZ, SZ)
    assert jnp.allclose(out, ref_f32, atol=5e-2), "kernel deviates from f32 semantics"

    print("KERNEL_OK")
</pallas_src>

<mosaic_0001>
module attributes {stable_mosaic.version = 11 : i64} {
  func.func @interp_kernel(%arg0: i32, %arg1: i32, %arg2: i32, %arg3: memref<1x2x128xbf16, #tpu.memory_space<vmem>>, %arg4: memref<1x128x256xbf16, #tpu.memory_space<vmem>>, %arg5: memref<2x256xf32, #tpu.memory_space<vmem>>) attributes {dimension_semantics = [#tpu.dimension_semantics<parallel>, #tpu.dimension_semantics<parallel>, #tpu.dimension_semantics<arbitrary>], iteration_bounds = array<i64: 6, 1, 1>, scalar_prefetch = 0 : i64, scratch_operands = 0 : i64, tpu.core_type = #tpu.core_type<tc>, window_params = [{transform_indices = @transform_0, window_bounds = array<i64: 1, 2, 128>}, {transform_indices = @transform_1, window_bounds = array<i64: 1, 128, 256>}, {transform_indices = @transform_2, window_bounds = array<i64: 2, 256>}]} {
    %c128_i32 = arith.constant 128 : i32
    %0 = arith.muli %arg2, %c128_i32 : i32
    %1 = tpu.assume_multiple %0, 128 : i32
    %c0 = arith.constant 0 : index
    %c0_0 = arith.constant 0 : index
    %2 = arith.index_cast %1 : i32 to index
    %3 = vector.load %arg3[%c0, %c0_0, %2] : memref<1x2x128xbf16, #tpu.memory_space<vmem>>, vector<1x2x128xbf16>
    %4 = vector.shape_cast %3 : vector<1x2x128xbf16> to vector<2x128xbf16>
    %c0_1 = arith.constant 0 : index
    %c0_2 = arith.constant 0 : index
    %c0_3 = arith.constant 0 : index
    %5 = vector.load %arg4[%c0_1, %c0_2, %c0_3] : memref<1x128x256xbf16, #tpu.memory_space<vmem>>, vector<1x128x256xbf16>
    %6 = vector.shape_cast %5 : vector<1x128x256xbf16> to vector<128x256xbf16>
    %cst = arith.constant dense<0.000000e+00> : vector<2x256xf32>
    %7 = tpu.matmul %4, %6, %cst {dimension_numbers = #tpu.dot_dimension_numbers<[1], [0], [0], [1], [0, 0, 1, 1], [], []>} : vector<2x128xbf16>, vector<128x256xbf16>, vector<2x256xf32> -> vector<2x256xf32>
    %c0_i32 = arith.constant 0 : i32
    %8 = arith.cmpi eq, %arg2, %c0_i32 : i32
    %9 = arith.extui %8 : i1 to i32
    %c0_i32_4 = arith.constant 0 : i32
    %10 = arith.cmpi ne, %9, %c0_i32_4 : i32
    scf.if %10 {
      %c0_7 = arith.constant 0 : index
      %c0_8 = arith.constant 0 : index
      %14 = vector.load %arg5[%c0_7, %c0_8] : memref<2x256xf32, #tpu.memory_space<vmem>>, vector<2x256xf32>
      tpu.vector_store %arg5[%c0_7, %c0_8], %7 {strides = array<i32>} : memref<2x256xf32, #tpu.memory_space<vmem>>, vector<2x256xf32>,
    } else {
    }
    %c0_i32_5 = arith.constant 0 : i32
    %11 = arith.cmpi sgt, %arg2, %c0_i32_5 : i32
    %12 = arith.extui %11 : i1 to i32
    %c0_i32_6 = arith.constant 0 : i32
    %13 = arith.cmpi ne, %12, %c0_i32_6 : i32
    scf.if %13 {
      %c0_7 = arith.constant 0 : index
      %c0_8 = arith.constant 0 : index
      %14 = vector.load %arg5[%c0_7, %c0_8] : memref<2x256xf32, #tpu.memory_space<vmem>>, vector<2x256xf32>
      %15 = arith.addf %14, %7 : vector<2x256xf32>
      %c0_9 = arith.constant 0 : index
      %c0_10 = arith.constant 0 : index
      %16 = vector.load %arg5[%c0_9, %c0_10] : memref<2x256xf32, #tpu.memory_space<vmem>>, vector<2x256xf32>
      tpu.vector_store %arg5[%c0_9, %c0_10], %15 {strides = array<i32>} : memref<2x256xf32, #tpu.memory_space<vmem>>, vector<2x256xf32>,
    } else {
    }
    return
  }
  func.func @transform_0(%arg0: i32, %arg1: i32, %arg2: i32) -> (i32, i32, i32) {
    %c0_i32 = arith.constant 0 : i32
    %c0_i32_0 = arith.constant 0 : i32
    %c0_i32_1 = arith.constant 0 : i32
    return %arg0, %c0_i32, %c0_i32_0 : i32, i32, i32
  }
  func.func @transform_1(%arg0: i32, %arg1: i32, %arg2: i32) -> (i32, i32, i32) {
    %c0_i32 = arith.constant 0 : i32
    return %arg0, %arg2, %arg1 : i32, i32, i32
  }
  func.func @transform_2(%arg0: i32, %arg1: i32, %arg2: i32) -> (i32, i32) {
    %c1_i32 = arith.constant 1 : i32
    %0 = arith.muli %arg0, %c1_i32 : i32
    %1 = arith.addi %0, %arg1 : i32
    %c0_i32 = arith.constant 0 : i32
    %c0_i32_0 = arith.constant 0 : i32
    return %c0_i32, %1 : i32, i32
  }
}

</mosaic_0001>

<bundles_post_ra>
// kernel: tpu_custom_call.1
= control target key start
LH: loop header
LB: loop body
LE: loop exit
PB: predicated region body
PF: predicated region fallthrough
CT: control target
= control target key end

     0   :  { %7 = vsyncpa [#allocation3], 0  ;;  %s1073_s0 = inlined_call_operand.hbm [shape: bf16[6,2,128], index: 0, kind: input, shape index: {}]   ;;  %s1074_s1 = inlined_call_operand.hbm [shape: bf16[6,128,256], index: 1, kind: input, shape index: {}]   ;;  %s1075_s2 = inlined_call_operand.hbm [shape: f32[2,1536], index: 2, kind: output, shape index: {}]  }
   0x1   :  { %9 = vsyncpa [#allocation3 + $0x1], 0 }
   0x2   :  { %10 = vsyncpa [#allocation6], 0 }
   0x3   :  { %12 = vsyncpa [#allocation6 + $0x1], 0 }
   0x4   :  { %13 = vsyncpa [#allocation4], 0 }
   0x5   :  { %15 = vsyncpa [#allocation4 + $0x1], 0  ;;  %s829_s9 = smov 0   ;;  %s831_s10 = smov 0  }
   0x6   :  { %s833_s11 = smov 0   ;;  %s835_s12 = smov 0  }
   0x7   :  { %s837_s13 = smov 0   ;;  %s839_s14 = smov 0  }
   0x8 LB: > { %s531_s15 = sadd.s32 4294967295, %s806_s14   ;;  %s532_s16 = sadd.s32 4294967294, %s806_s14   ;;  %s806_s14 = sphi %s839_s14, %s21_s14   ;;  %s802_s13 = sphi %s837_s13, %s1093_s13   ;;  %s798_s12 = sphi %s835_s12, %s1092_s12   ;;  %s794_s11 = sphi %s833_s11, %s1091_s11   ;;  %s790_s10 = sphi %s831_s10, %s1090_s10   ;;  %s786_s9 = sphi %s829_s9, %s1089_s9  }
   0x9   : > { %s40_s17 = sadd.s32 1, %s802_s13  ;;  %s47_s18 = sadd.s32 1, %s794_s11 }
   0xa   : > { %p42_p0 = scmp.ge.s32.totalorder %s40_s17, 6  ;;  %p54_p1 = scmp.ne.s32.totalorder %s794_s11, %s790_s10 }
   0xb   : > { %p55_p2 = scmp.eq.s32.totalorder %s806_s14, 0  ;;  %p60_p3 = scmp.ne.s32.totalorder %s790_s10, %s786_s9 }
   0xc   : > { %s1095_s17 = smov (%p42_p0, %s40_s17), 0  ;;  %p61_p5 = scmp.eq.s32.totalorder %s531_s15, 0 }
   0xd   : > { %p870_p4 = por %p55_p2, %p54_p1  ;;  %s44_s20 = ssub.s32 %s802_s13, %s1095_s17 }
   0xe   : > { %p116_p6 = scmp.eq.s32.totalorder %s531_s15, 5  ;;  %p45_p7 = scmp.eq.s32.totalorder %s44_s20, 0 }
   0xf   : > { %p876_p8 = por %p61_p5, %p60_p3  ;;  %p122_p10 = scmp.eq.s32.totalorder %s532_s16, 5 }
  0x10   : > { %p880_p9 = por %p116_p6, %p54_p1  ;;  %p583_p12 = scmp.lt.s32.totalorder %s806_s14, 6 }
  0x11   : > { %s1079_s21 = scalar_select %p876_p8, 1, 0 }
  0x12   : > { %s1080_s22 = scalar_select %p880_p9, 1, 0 }
  0x13   : > { %s885_s23 = scalar_select %p45_p7, %s794_s11, %s47_s18  }
  0x14   : > { %p887_p11 = por %p122_p10, %p60_p3  ;;  %s893_s25 = sand.u32 1, %s794_s11  }
  0x15   : > { %s535_s26 = sshll.u32 %s802_s13, 4  ;;  %s145_s27 = scalar_lea.vmem [#allocation2], %s893_s25 }
  0x16   : > { %s1081_s24 = scalar_select %p887_p11, 1, 0 }
  0x17   : > { %s152_s28 = sshll.u32 %s145_s27, 4  ;;  %s900_s3 = scalar_lea.hbm %s1073_s0, %s535_s26  ;;  %s902_s28 = int_to_ptr.vmem [resolvable:$true] %s152_s28 }
  0x18   : > { %p906_p13 = pnand %p583_p12, %p870_p4  ;;  %s536_s5 = sshll.u32 %s893_s25, 7 }
  0x19   : > { %s143_s6 = scalar_lea.sflag [#allocation3], %s893_s25  ;;  %s660_s7 = scalar_lea.hbm %s900_s3, 16 }
  0x1a   : > { %p661_p2 = scmp.ne.s32.totalorder %s900_s3, %s660_s7  ;;  %p662_p3 = pneg %p906_p13 }
  0x1b   : > { %s665_s16 = scalar_lea.hbm %s1073_s0, 96  ;;  %p666_p4 = scmp.lt.u32.totalorder %s900_s3, %s1073_s0 }
  0x1c   : > { %p663_p5 = pnand %p662_p3, %p661_p2  ;;  %p667_p7 = scmp.lt.u32.totalorder %s665_s16, %s660_s7 }
  0x1d   : > { %p669_p12 = scmp.lt.u32.totalorder %s660_s7, %s900_s3 }
  0x1e   : > { %p664_p6 = pneg %p663_p5  ;;  %p668_p10 = por %p667_p7, %p666_p4 }
  0x20   : > { %p670_p0 = por %p669_p12, %p668_p10 }
  0x22   : > { %p671_p1 = pnand %p670_p0, %p664_p6 }
  0x24   : > { %674 = shalt.err (!%p671_p1)
}
  0x25   : > { %s675_s20 = scalar_lea.vmem %s902_s28, 16  ;;  %s808_s26 = smov [#allocation2]  }
  0x26   : > { %p676_p2 = scmp.ne.s32.totalorder %s902_s28, %s675_s20  ;;  %s680_s27 = sshll.u32 %s808_s26, 4  ;;  %s681_s27 = int_to_ptr.vmem [resolvable:$false] %s680_s27 }
  0x27   : > { %s682_s29 = scalar_lea.vmem %s681_s27, 32  ;;  %p683_p9 = scmp.lt.s32.totalorder %s902_s28, %s681_s27 }
  0x28   : > { %p678_p5 = pnand %p676_p2, %p662_p3  ;;  %p684_p4 = scmp.lt.s32.totalorder %s682_s29, %s675_s20 }
  0x2a   : > { %p679_p11 = pneg %p678_p5  ;;  %p685_p7 = por %p684_p4, %p683_p9 }
  0x2c   : > { %p686_p10 = pnand %p685_p7, %p679_p11 }
  0x2e   : > { %689 = shalt.err (!%p686_p10)
}
  0x2f   : > { %575 = dma.hbm_to_vmem [thread:$0]  (!%p906_p13), %s900_s3, 16, %s902_s28, %s143_s6  }
  0x30   : > { %p1083_p0 = scmp.lt.s32.totalorder %s806_s14, 7  ;;  %p1084_p1 = scmp.ge.s32.totalorder %s806_s14, 1 }
  0x31   : > { %s564_s7 = sshll.u32 %s802_s13, 11  ;;  %s163_s8 = scalar_lea.vmem [#allocation5], %s536_s5 }
  0x32   : > { %p943_p6 = pnand %p1084_p1, %p1083_p0  ;;  %s175_s15 = sshll.u32 %s163_s8, 4  ;;  %s955_s15 = int_to_ptr.vmem [resolvable:$true] %s175_s15 }
  0x33   : > { %s953_s19 = scalar_lea.hbm %s1074_s1, %s564_s7  ;;  %s160_s28 = scalar_lea.sflag [#allocation6], %s893_s25 }
  0x34   : > { %s690_s3 = scalar_lea.hbm %s953_s19, 2048  ;;  %s695_s20 = scalar_lea.hbm %s1074_s1, 12288 }
  0x35   : > { %p691_p9 = scmp.ne.s32.totalorder %s953_s19, %s690_s3  ;;  %p696_p2 = scmp.lt.u32.totalorder %s953_s19, %s1074_s1 }
  0x36   : > { %p697_p5 = scmp.lt.u32.totalorder %s695_s20, %s690_s3  ;;  %p699_p7 = scmp.lt.u32.totalorder %s690_s3, %s953_s19 }
  0x37   : > { %p693_p11 = pnand %p691_p9, %p662_p3 }
  0x38   : > { %p698_p4 = por %p697_p5, %p696_p2 }
  0x39   : > { %p694_p12 = pneg %p693_p11 }
  0x3a   : > { %p700_p10 = por %p699_p7, %p698_p4 }
  0x3c   : > { %p701_p0 = pnand %p700_p10, %p694_p12 }
  0x3e   : > { %704 = shalt.err (!%p701_p0)
}
  0x3f   : > { %s705_s29 = scalar_lea.vmem %s955_s15, 2048  ;;  %s809_s7 = smov [#allocation5]  }
  0x40   : > { %p706_p1 = scmp.ne.s32.totalorder %s955_s15, %s705_s29  ;;  %s710_s8 = sshll.u32 %s809_s7, 4  ;;  %s711_s8 = int_to_ptr.vmem [resolvable:$false] %s710_s8 }
  0x41   : > { %s712_s16 = scalar_lea.vmem %s711_s8, 4096  ;;  %p713_p8 = scmp.lt.s32.totalorder %s955_s15, %s711_s8 }
  0x42   : > { %p708_p9 = pnand %p706_p1, %p662_p3  ;;  %p714_p2 = scmp.lt.s32.totalorder %s712_s16, %s705_s29 }
  0x44   : > { %p709_p11 = pneg %p708_p9  ;;  %p715_p5 = por %p714_p2, %p713_p8 }
  0x46   : > { %p716_p4 = pnand %p715_p5, %p709_p11 }
  0x48   : > { %719 = shalt.err (!%p716_p4)
}
  0x49   : > { %s810_s18 = smov 128   ;;  %s811_s3 = smov 8  }
  0x4a   : > { %578 = dma.hbm_to_vmem [thread:$0]  (!%p906_p13), %s953_s19, 2048, %s955_s15, %s160_s28, %s810_s18, %s810_s18, %s811_s3  }
  0x4b   : > { %187 = sbr.rel (%p943_p6) target bundleno = 348 (0x15c), region = 28  ;;  %s986_s5 = sand.u32 (!%p943_p6), 1, %s790_s10  }
  0x4c   : > { %s190_s6 = scalar_lea.sflag (!%p943_p6), [#allocation3], %s986_s5  ;;  %s192_s20 = scalar_lea.vmem (!%p943_p6), [#allocation2], %s986_s5 }
  0x4d   : > { %p1086_p8 = scmp.ne.s32.totalorder (!%p943_p6), %s1079_s21, 0 }
  0x52   : > { %773 = dma.done.wait (%p1086_p8), %s190_s6, 16  }
  0x53   : > { %775 = vsyncadd (%p1086_p8), %s190_s6, 4294967280  ;;  %s540_s25 = sshll.u32 %s986_s5, 7  ;;  %s198_s4 = scalar_lea.sflag [#allocation6], %s986_s5 }
  0x54   : > { %s996_s30 = scalar_lea.vmem [#allocation5], %s540_s25 }
  0x55   : > { %777 = dma.done.wait (%p1086_p8), %s198_s4, 2048  }
  0x56   : > { %779 = vsyncadd (%p1086_p8), %s198_s4, 4294965248  ;;  %v812_v0 = vmov 0   ;;  %v636_v1 = vld [vmem:[%s996_s30 + $0x4] ss:$8 sps:$4 sm:$0xff]   ;;  %v638_v2 = vld [vmem:[%s996_s30] ss:$8 sps:$4 sm:$0xff]  }
  0x57   : > { %364 = vmatprep.mubr.bf16.mxu0 %v812_v0  ;;  %332 = vmatprep.subr.bf16.mxu0 %v636_v1  ;;  %v639_v3 = vld [vmem:[%s996_s30 + $0x14] ss:$8 sps:$4 sm:$0xff]   ;;  %v641_v4 = vld [vmem:[%s996_s30 + $0x10] ss:$8 sps:$4 sm:$0xff]   ;;  %v642_v5 = vld [vmem:[%s996_s30 + $0x24] ss:$8 sps:$4 sm:$0xff]  }
  0x58   : > { %333 = vmatpush1.bf16.msra.mxu0 %v638_v2  ;;  %v644_v6 = vld [vmem:[%s996_s30 + $0x20] ss:$8 sps:$4 sm:$0xff]   ;;  %v645_v7 = vld [vmem:[%s996_s30 + $0x34] ss:$8 sps:$4 sm:$0xff]   ;;  %v647_v8 = vld [vmem:[%s996_s30 + $0x30] ss:$8 sps:$4 sm:$0xff]  }
  0x59   : > { %334 = vmatprep.subr.bf16.mxu0 %v639_v3  ;;  %v648_v9 = vld [vmem:[%s996_s30 + $0x44] ss:$8 sps:$4 sm:$0xff]   ;;  %v650_v10 = vld [vmem:[%s996_s30 + $0x40] ss:$8 sps:$4 sm:$0xff]   ;;  %v651_v11 = vld [vmem:[%s996_s30 + $0x54] ss:$8 sps:$4 sm:$0xff]  }
  0x5a   : > { %v653_v12 = vld [vmem:[%s996_s30 + $0x50] ss:$8 sps:$4 sm:$0xff]   ;;  %v654_v13 = vld [vmem:[%s996_s30 + $0x64] ss:$8 sps:$4 sm:$0xff]   ;;  %v656_v14 = vld [vmem:[%s996_s30 + $0x60] ss:$8 sps:$4 sm:$0xff]  }
  0x5b   : > { %v657_v15 = vld [vmem:[%s996_s30 + $0x74] ss:$8 sps:$4 sm:$0xff]   ;;  %v659_v16 = vld [vmem:[%s996_s30 + $0x70] ss:$8 sps:$4 sm:$0xff]   ;;  %s541_s21 = sshll.u32 %s986_s5, 2  ;;  %s565_s15 = sshll.u32 %s798_s12, 6 }
  0x5c   : > { %335 = vmatpush1.bf16.msra.mxu0 %v641_v4  ;;  %v235_v17 = vld [vmem:[%s192_s20] sm:$0x1]  ;;  %s225_s19 = scalar_lea.vmem [#allocation7], %s541_s21  ;;  %s1025_s29 = scalar_lea.hbm %s1075_s2, %s565_s15 }
  0x5d   : > { %336 = vmatprep.subr.bf16.mxu0 %v642_v5  ;;  %s423_s28 = sshll.u32 %s225_s19, 4  ;;  %s408_s7 = scalar_lea.sflag [#allocation4], %s986_s5  ;;  %s1027_s28 = int_to_ptr.vmem [resolvable:$true] %s423_s28 }
  0x5e   : > { %s720_s12 = scalar_lea.vmem %s1027_s28, 64  ;;  %p1087_p3 = scmp.ne.s32.totalorder %s1080_s22, 0 }
  0x5f   : > { %p721_p13 = scmp.ne.s32.totalorder %s1027_s28, %s720_s12  ;;  %s813_s8 = smov [#allocation7]  }
  0x60   : > { %337 = vmatpush1.bf16.msra.mxu0 %v644_v6  ;;  %s724_s16 = sshll.u32 %s813_s8, 4  ;;  %s725_s16 = int_to_ptr.vmem [resolvable:$false] %s724_s16 }
  0x61   : > { %338 = vmatprep.subr.bf16.mxu0 %v645_v7  ;;  %p722_p6 = pnand %p721_p13, %p1087_p3  ;;  %s726_s18 = scalar_lea.vmem %s725_s16, 128 }
  0x62   : > { %p727_p7 = scmp.lt.s32.totalorder %s1027_s28, %s725_s16  ;;  %p728_p10 = scmp.lt.s32.totalorder %s726_s18, %s720_s12 }
  0x63   : > { %p723_p12 = pneg %p722_p6 }
  0x64   : > { %339 = vmatpush1.bf16.msra.mxu0 %v647_v8  ;;  %p729_p0 = por %p728_p10, %p727_p7 }
  0x65   : > { %340 = vmatprep.subr.bf16.mxu0 %v648_v9 }
  0x66   : > { %p730_p1 = pnand %p729_p0, %p723_p12 }
  0x68   : > { %341 = vmatpush1.bf16.msra.mxu0 %v650_v10 }
  0x69   : > { %342 = vmatprep.subr.bf16.mxu0 %v651_v11 }
  0x6c   : > { %343 = vmatpush1.bf16.msra.mxu0 %v653_v12 }
  0x6d   : > { %344 = vmatprep.subr.bf16.mxu0 %v654_v13 }
  0x70   : > { %345 = vmatpush1.bf16.msra.mxu0 %v656_v14 }
  0x71   : > { %346 = vmatprep.subr.bf16.mxu0 %v657_v15 }
  0x74   : > { %347 = vmatpush1.bf16.msra.mxu0 %v659_v16 }
  0x77   : > { %365 = vmatmul.mubr.bf16.vlgmr.msra.gmra.mrb[0].mxu0 %v235_v17 }
 0x14a   : > { %v366_v18 = vpop.f32.mrb[0].mxu0 }
 0x14b   : > { %v368_v19 = vpop.f32.mrb[1].mxu0 }
 0x14c   : > { %v379_v20 = vcombine.low %v366_v18, %v368_v19  ;;  %v370_v21 = vpop.f32.mrb[2].mxu0 }
 0x14d   : > { %v371_v22 = vpop.f32.mrb[3].mxu0 }
 0x14e   : > { %558 = vst.sshfl [vmem:[%s225_s19] sm:$0x33 pattern:$0x76325410] %v379_v20 }
 0x14f   : > { %733 = shalt.err (!%p730_p1)
}
 0x150   : > { %s734_s3 = scalar_lea.hbm %s1025_s29, 64  ;;  %s738_s20 = scalar_lea.hbm %s1075_s2, 384 }
 0x151   : > { %p735_p9 = scmp.ne.s32.totalorder %s1025_s29, %s734_s3  ;;  %p739_p5 = scmp.lt.u32.totalorder %s1025_s29, %s1075_s2 }
 0x152   : > { %p740_p4 = scmp.lt.u32.totalorder %s738_s20, %s734_s3  ;;  %p742_p13 = scmp.lt.u32.totalorder %s734_s3, %s1025_s29 }
 0x153   : > { %p736_p11 = pnand %p735_p9, %p1087_p3 }
 0x154   : > { %p741_p8 = por %p740_p4, %p739_p5 }
 0x155   : > { %p737_p2 = pneg %p736_p11 }
 0x156   : > { %p743_p6 = por %p742_p13, %p741_p8 }
 0x158   : > { %p744_p12 = pnand %p743_p6, %p737_p2 }
 0x15a   : > { %747 = shalt.err (!%p744_p12)
}
 0x15b   : > { %570 = dma.vmem_to_hbm [thread:$0]  (%p1087_p3), %s1027_s28, 64, %s1025_s29, %s408_s7  }
 0x15c PF: > { %p584_p7 = scmp.ge.s32.totalorder %s806_s14, 2  ;;  %s435_s30 = sand.u32 1, %s786_s9  }
 0x15d   : > { %p1088_p10 = scmp.ne.s32.totalorder %s1081_s24, 0  ;;  %s436_s21 = scalar_lea.sflag [#allocation4], %s435_s30 }
 0x15f   : > { %p580_p0 = pnand %p584_p7, %p1088_p10 }
 0x161   : > { %781 = dma.done.wait (!%p580_p0), %s436_s21, 64  }
 0x162   : > { %783 = vsyncadd (!%p580_p0), %s436_s21, 4294967232  ;;  %s21_s14 = sadd.s32 1, %s806_s14   ;;  %s1089_s9 = smov %s790_s10 }
 0x163   : > { %p18_p1 = scmp.ge.s32.totalorder %s21_s14, 8   ;;  %s1090_s10 = smov %s794_s11 }
 0x164   : > { %s1091_s11 = smov %s885_s23  ;;  %s1092_s12 = smov %s802_s13 }
 0x165   : > { %s1093_s13 = smov %s1095_s17  ;;  %20 = sbr.rel (!%p18_p1) target bundleno = 8 (0x8), region = 95 }
 0x16c   :  { %441 = vsyncpa [#allocation3], 1 }
 0x16d   :  { %443 = vsyncpa [#allocation3 + $0x1], 1 }
 0x16e   :  { %444 = vsyncpa [#allocation6], 1 }
 0x16f   :  { %446 = vsyncpa [#allocation6 + $0x1], 1 }
 0x170   :  { %447 = vsyncpa [#allocation4], 1 }
 0x171   :  { %449 = vsyncpa [#allocation4 + $0x1], 1 }

</bundles_post_ra>
